<compile_context>
chip_gen: v6e
topology: v6e:2x2x1
jax: 0.10.0
libtpu: 0.0.40
codegen_flags: <defaults>
</compile_context>

<pallas_src>
import jax
import jax.numpy as jnp
from jax.experimental import pallas as pl
from jax.experimental.pallas import tpu as pltpu

EPS = 1e-3  # matches BatchNorm2d(..., eps=0.001) in the module


def conv_bn_add_kernel(x_ref, w_ref, gamma_ref, beta_ref, res_ref, o_ref):
    # x_ref:     (Cin, M)   activations, channel-major (NCHW flattened)
    # w_ref:     (Cout, Cin) 1x1 conv weight (torch OIHW reshaped, no transpose)
    # gamma_ref: (Cout, 1)   BN scale
    # beta_ref:  (Cout, 1)   BN shift
    # res_ref:   (Cout, M)   residual (x55)
    # o_ref:     (Cout, M)   output
    x = x_ref[...]
    w = w_ref[...]

    # 1x1 convolution == (Cout, Cin) @ (Cin, M) matmul on the MXU.
    y = jnp.dot(w, x, preferred_element_type=jnp.float32)  # (Cout, M)

    # BatchNorm2d (training mode): biased batch statistics over N*H*W == lanes.
    m = jnp.float32(y.shape[1])
    mean = jnp.sum(y, axis=1, keepdims=True) / m          # (Cout, 1)
    d = y - mean
    var = jnp.sum(d * d, axis=1, keepdims=True) / m       # (Cout, 1), biased

    # Fold BN affine into per-channel scale/shift: out = y*scale + shift + res.
    scale = gamma_ref[...] * jax.lax.rsqrt(var + EPS)     # (Cout, 1)
    shift = beta_ref[...] - mean * scale                  # (Cout, 1)

    o_ref[...] = (y * scale + shift + res_ref[...]).astype(o_ref.dtype)


def conv_bn_add(x67_nchw, x55_nchw, w_oihw, gamma, beta):
    """Wrapper. Inputs are NCHW (torch layout); all reshapes are free for N=1."""
    N, Cin, H, W = x67_nchw.shape
    Cout = w_oihw.shape[0]
    M = N * H * W

    # (N, C, H, W) -> (C, N*H*W). For N == 1 the transpose moves a size-1 dim
    # and folds into a free reshape (no data movement).
    x2d = jnp.transpose(x67_nchw, (1, 0, 2, 3)).reshape(Cin, M)
    res2d = jnp.transpose(x55_nchw, (1, 0, 2, 3)).reshape(Cout, M)
    w2d = w_oihw.reshape(Cout, Cin)           # (Cout, Cin), no transpose needed
    gamma2d = gamma.reshape(Cout, 1)
    beta2d = beta.reshape(Cout, 1)

    flops = 2 * M * Cin * Cout
    bytes_accessed = 4 * (Cin * M + Cout * Cin + 2 * Cout + 2 * Cout * M)

    out2d = pl.pallas_call(
        conv_bn_add_kernel,
        out_shape=jax.ShapeDtypeStruct((Cout, M), jnp.float32),
        in_specs=[
            pl.BlockSpec((Cin, M), lambda: (0, 0)),
            pl.BlockSpec((Cout, Cin), lambda: (0, 0)),
            pl.BlockSpec((Cout, 1), lambda: (0, 0)),
            pl.BlockSpec((Cout, 1), lambda: (0, 0)),
            pl.BlockSpec((Cout, M), lambda: (0, 0)),
        ],
        out_specs=pl.BlockSpec((Cout, M), lambda: (0, 0)),
        cost_estimate=pl.CostEstimate(
            flops=flops, transcendentals=Cout, bytes_accessed=bytes_accessed
        ),
        compiler_params=pltpu.CompilerParams(vmem_limit_bytes=4 << 20),
    )(x2d, w2d, gamma2d, beta2d, res2d)

    # (Cout, N*H*W) -> (N, Cout, H, W); free for N == 1.
    return jnp.transpose(out2d.reshape(Cout, N, H, W), (1, 0, 2, 3))


def reference(x67_nchw, x55_nchw, w_oihw, gamma, beta):
    """Plain-JAX reference (same math, no Pallas)."""
    N, Cin, H, W = x67_nchw.shape
    Cout = w_oihw.shape[0]
    x = jnp.transpose(x67_nchw, (0, 2, 3, 1)).reshape(-1, Cin)
    w = jnp.transpose(w_oihw.reshape(Cout, Cin), (1, 0))
    y = x @ w
    mean = jnp.mean(y, axis=0, keepdims=True)
    var = jnp.mean((y - mean) ** 2, axis=0, keepdims=True)
    y = (y - mean) / jnp.sqrt(var + EPS)
    y = y * gamma.reshape(1, -1) + beta.reshape(1, -1)
    y = y + jnp.transpose(x55_nchw, (0, 2, 3, 1)).reshape(-1, Cout)
    return jnp.transpose(y.reshape(N, H, W, Cout), (0, 3, 1, 2))


if __name__ == "__main__":
    # Shapes implied by the module: x67 = (1,120,28,28), x55 = (1,40,28,28)
    N, Cin, Cout, H, W = 1, 120, 40, 28, 28

    key = jax.random.PRNGKey(0)
    k1, k2, k3, k4, k5 = jax.random.split(key, 5)
    x67 = jax.random.normal(k1, (N, Cin, H, W), dtype=jnp.float32)
    x55 = jax.random.normal(k2, (N, Cout, H, W), dtype=jnp.float32)
    # Deterministic parameter init (synthetic; not a checkpoint load).
    w_conv = jax.random.normal(k3, (Cout, Cin, 1, 1), dtype=jnp.float32) * 0.05
    gamma = 1.0 + 0.1 * jax.random.normal(k4, (Cout,), dtype=jnp.float32)
    beta = 0.1 * jax.random.normal(k5, (Cout,), dtype=jnp.float32)

    out = conv_bn_add(x67, x55, w_conv, gamma, beta)
    out = jax.block_until_ready(out)

    ref = reference(x67, x55, w_conv, gamma, beta)
    assert out.shape == (N, Cout, H, W)
    assert jnp.allclose(out, ref, atol=1e-4, rtol=1e-4)

    # TODO(synk): running_mean/running_var updates (training-mode side effect)
    # are not produced; only the forward output is computed.
    print("KERNEL_OK")
</pallas_src>

<mosaic_0001>
module attributes {stable_mosaic.version = 11 : i64} {
  func.func @conv_bn_add_kernel(%arg0: memref<120x784xf32, #tpu.memory_space<vmem>>, %arg1: memref<40x120xf32, #tpu.memory_space<vmem>>, %arg2: memref<40x1xf32, #tpu.memory_space<vmem>>, %arg3: memref<40x1xf32, #tpu.memory_space<vmem>>, %arg4: memref<40x784xf32, #tpu.memory_space<vmem>>, %arg5: memref<40x784xf32, #tpu.memory_space<vmem>>) attributes {dimension_semantics = [], scalar_prefetch = 0 : i64, scratch_operands = 0 : i64, tpu.core_type = #tpu.core_type<tc>} {
    %c0 = arith.constant 0 : index
    %c0_0 = arith.constant 0 : index
    %0 = vector.load %arg0[%c0, %c0_0] : memref<120x784xf32, #tpu.memory_space<vmem>>, vector<120x784xf32>
    %c0_1 = arith.constant 0 : index
    %c0_2 = arith.constant 0 : index
    %1 = vector.load %arg1[%c0_1, %c0_2] : memref<40x120xf32, #tpu.memory_space<vmem>>, vector<40x120xf32>
    %cst = arith.constant dense<0.000000e+00> : vector<40x784xf32>
    %2 = tpu.matmul %1, %0, %cst {dimension_numbers = #tpu.dot_dimension_numbers<[1], [0], [0], [1], [0, 0, 1, 1], [], []>} : vector<40x120xf32>, vector<120x784xf32>, vector<40x784xf32> -> vector<40x784xf32>
    %cst_3 = arith.constant dense<0.000000e+00> : vector<40xf32>
    %3 = vector.multi_reduction <add>, %2, %cst_3 [1] : vector<40x784xf32> to vector<40xf32>
    %4 = vector.shape_cast %3 : vector<40xf32> to vector<40x1xf32>
    %cst_4 = arith.constant 7.840000e+02 : f32
    %5 = vector.broadcast %cst_4 : f32 to vector<40x1xf32>
    %6 = arith.divf %4, %5 : vector<40x1xf32>
    %7 = vector.broadcast %6 : vector<40x1xf32> to vector<40x784xf32>
    %8 = arith.subf %2, %7 : vector<40x784xf32>
    %9 = arith.mulf %8, %8 : vector<40x784xf32>
    %cst_5 = arith.constant dense<0.000000e+00> : vector<40xf32>
    %10 = vector.multi_reduction <add>, %9, %cst_5 [1] : vector<40x784xf32> to vector<40xf32>
    %11 = vector.shape_cast %10 : vector<40xf32> to vector<40x1xf32>
    %cst_6 = arith.constant 7.840000e+02 : f32
    %12 = vector.broadcast %cst_6 : f32 to vector<40x1xf32>
    %13 = arith.divf %11, %12 : vector<40x1xf32>
    %c0_7 = arith.constant 0 : index
    %c0_8 = arith.constant 0 : index
    %14 = vector.load %arg2[%c0_7, %c0_8] : memref<40x1xf32, #tpu.memory_space<vmem>>, vector<40x1xf32>
    %cst_9 = arith.constant 1.000000e-03 : f32
    %15 = vector.broadcast %cst_9 : f32 to vector<40x1xf32>
    %16 = arith.addf %13, %15 : vector<40x1xf32>
    %17 = math.rsqrt %16 : vector<40x1xf32>
    %18 = arith.mulf %14, %17 : vector<40x1xf32>
    %c0_10 = arith.constant 0 : index
    %c0_11 = arith.constant 0 : index
    %19 = vector.load %arg3[%c0_10, %c0_11] : memref<40x1xf32, #tpu.memory_space<vmem>>, vector<40x1xf32>
    %20 = arith.mulf %6, %18 : vector<40x1xf32>
    %21 = arith.subf %19, %20 : vector<40x1xf32>
    %22 = vector.broadcast %18 : vector<40x1xf32> to vector<40x784xf32>
    %23 = arith.mulf %2, %22 : vector<40x784xf32>
    %24 = vector.broadcast %21 : vector<40x1xf32> to vector<40x784xf32>
    %25 = arith.addf %23, %24 : vector<40x784xf32>
    %c0_12 = arith.constant 0 : index
    %c0_13 = arith.constant 0 : index
    %26 = vector.load %arg4[%c0_12, %c0_13] : memref<40x784xf32, #tpu.memory_space<vmem>>, vector<40x784xf32>
    %27 = arith.addf %25, %26 : vector<40x784xf32>
    %c0_14 = arith.constant 0 : index
    %c0_15 = arith.constant 0 : index
    %28 = vector.load %arg5[%c0_14, %c0_15] : memref<40x784xf32, #tpu.memory_space<vmem>>, vector<40x784xf32>
    tpu.vector_store %arg5[%c0_14, %c0_15], %27 {strides = array<i32>} : memref<40x784xf32, #tpu.memory_space<vmem>>, vector<40x784xf32>,
    return
  }
}

</mosaic_0001>

<bundles_post_ra>
// kernel: tpu_custom_call.1
= control target key start
LH: loop header
LB: loop body
LE: loop exit
PB: predicated region body
PF: predicated region fallthrough
CT: control target
= control target key end

     0   :  { %vm131_vm0 = vcmask 982016   ;;  %v1095_v61 = vmov 0.0   ;;  %s1944_s0 = inlined_call_operand.vmem [shape: f32[120,784], index: 0, kind: input, shape index: {}]   ;;  %s1945_s1 = inlined_call_operand.vmem [shape: f32[40,120], index: 1, kind: input, shape index: {}]   ;;  %s1946_s2 = inlined_call_operand.vmem [shape: f32[40,1], index: 2, kind: input, shape index: {}]   ;;  %s1947_s3 = inlined_call_operand.vmem [shape: f32[40,1], index: 3, kind: input, shape index: {}]   ;;  %s1948_s4 = inlined_call_operand.vmem [shape: f32[40,784], index: 4, kind: input, shape index: {}]   ;;  %s1949_s5 = inlined_call_operand.hbm [shape: f32[40,784], index: 5, kind: output, shape index: {}]  }
   0x1   :  { %v120_v0 = vld [vmem:[%s1944_s0 + $0x318] sm:$0xff]  ;;  %v119_v1 = vld [vmem:[%s1944_s0 + $0x310] sm:$0xff]  ;;  %v122_v2 = vld [vmem:[%s1944_s0 + $0x328] sm:$0xff]  ;;  %211 = vmatprep.mubr.f32.mxu0 %v1095_v61  ;;  %306 = vmatprep.mubr.f32.mxu1 %v1095_v61 }
   0x2   :  { %149 = vmatprep.subr.mxu0 %v120_v0  ;;  %244 = vmatprep.subr.mxu1 %v122_v2  ;;  %v113_v3 = vld [vmem:[%s1944_s0 + $0x2e0] sm:$0xff]  ;;  %v112_v5 = vld [vmem:[%s1944_s0 + $0x2d8] sm:$0xff]  ;;  %v115_v6 = vld [vmem:[%s1944_s0 + $0x2f0] sm:$0xff] }
   0x3   :  { %v121_v4 = vld [vmem:[%s1944_s0 + $0x320] sm:$0xff]  ;;  %150 = vmatpush1.msra.mxu0 %v119_v1  ;;  %v106_v7 = vld [vmem:[%s1944_s0 + $0x2a8] sm:$0xff]  ;;  %v108_v10 = vld [vmem:[%s1944_s0 + $0x2b8] sm:$0xff] }
   0x4   :  { %245 = vmatpush1.msra.mxu1 %v121_v4  ;;  %v114_v8 = vld [vmem:[%s1944_s0 + $0x2e8] sm:$0xff]  ;;  %151 = vmatprep.subr.mxu0 %v113_v3  ;;  %v105_v9 = vld [vmem:[%s1944_s0 + $0x2a0] sm:$0xff]  ;;  %v99_v11 = vld [vmem:[%s1944_s0 + $0x270] sm:$0xff] }
   0x5   :  { %246 = vmatprep.subr.mxu1 %v115_v6  ;;  %152 = vmatpush1.msra.mxu0 %v112_v5  ;;  %v107_v12 = vld [vmem:[%s1944_s0 + $0x2b0] sm:$0xff]  ;;  %v101_v13 = vld [vmem:[%s1944_s0 + $0x280] sm:$0xff]  ;;  %v98_v14 = vld [vmem:[%s1944_s0 + $0x268] sm:$0xff] }
   0x6   :  { %247 = vmatpush1.msra.mxu1 %v114_v8  ;;  %153 = vmatprep.subr.mxu0 %v106_v7  ;;  %v100_v15 = vld [vmem:[%s1944_s0 + $0x278] sm:$0xff]  ;;  %v94_v17 = vld [vmem:[%s1944_s0 + $0x248] sm:$0xff]  ;;  %v91_v18 = vld [vmem:[%s1944_s0 + $0x230] sm:$0xff] }
   0x7   :  { %248 = vmatprep.subr.mxu1 %v108_v10  ;;  %154 = vmatpush1.msra.mxu0 %v105_v9  ;;  %v92_v16 = vld [vmem:[%s1944_s0 + $0x238] sm:$0xff]  ;;  %v93_v19 = vld [vmem:[%s1944_s0 + $0x240] sm:$0xff]  ;;  %v87_v21 = vld [vmem:[%s1944_s0 + $0x210] sm:$0xff] }
   0x8   :  { %249 = vmatpush1.msra.mxu1 %v107_v12  ;;  %155 = vmatprep.subr.mxu0 %v99_v11  ;;  %v85_v20 = vld [vmem:[%s1944_s0 + $0x200] sm:$0xff]  ;;  %v84_v22 = vld [vmem:[%s1944_s0 + $0x1f8] sm:$0xff]  ;;  %v86_v23 = vld [vmem:[%s1944_s0 + $0x208] sm:$0xff] }
   0x9   :  { %250 = vmatprep.subr.mxu1 %v101_v13  ;;  %156 = vmatpush1.msra.mxu0 %v98_v14  ;;  %v78_v24 = vld [vmem:[%s1944_s0 + $0x1c8] sm:$0xff]  ;;  %v80_v25 = vld [vmem:[%s1944_s0 + $0x1d8] sm:$0xff]  ;;  %v77_v26 = vld [vmem:[%s1944_s0 + $0x1c0] sm:$0xff] }
   0xa   :  { %251 = vmatpush1.msra.mxu1 %v100_v15  ;;  %157 = vmatprep.subr.mxu0 %v92_v16  ;;  %v79_v27 = vld [vmem:[%s1944_s0 + $0x1d0] sm:$0xff]  ;;  %v73_v29 = vld [vmem:[%s1944_s0 + $0x1a0] sm:$0xff]  ;;  %v70_v30 = vld [vmem:[%s1944_s0 + $0x188] sm:$0xff] }
   0xb   :  { %252 = vmatprep.subr.mxu1 %v94_v17  ;;  %158 = vmatpush1.msra.mxu0 %v91_v18  ;;  %v71_v28 = vld [vmem:[%s1944_s0 + $0x190] sm:$0xff]  ;;  %v72_v31 = vld [vmem:[%s1944_s0 + $0x198] sm:$0xff]  ;;  %v66_v33 = vld [vmem:[%s1944_s0 + $0x168] sm:$0xff] }
   0xc   :  { %253 = vmatpush1.msra.mxu1 %v93_v19  ;;  %159 = vmatprep.subr.mxu0 %v85_v20  ;;  %v64_v32 = vld [vmem:[%s1944_s0 + $0x158] sm:$0xff]  ;;  %v63_v34 = vld [vmem:[%s1944_s0 + $0x150] sm:$0xff]  ;;  %v65_v35 = vld [vmem:[%s1944_s0 + $0x160] sm:$0xff] }
   0xd   :  { %254 = vmatprep.subr.mxu1 %v87_v21  ;;  %160 = vmatpush1.msra.mxu0 %v84_v22  ;;  %v57_v36 = vld [vmem:[%s1944_s0 + $0x120] sm:$0xff]  ;;  %v59_v37 = vld [vmem:[%s1944_s0 + $0x130] sm:$0xff]  ;;  %v56_v38 = vld [vmem:[%s1944_s0 + $0x118] sm:$0xff] }
   0xe   :  { %255 = vmatpush1.msra.mxu1 %v86_v23  ;;  %161 = vmatprep.subr.mxu0 %v78_v24  ;;  %v58_v39 = vld [vmem:[%s1944_s0 + $0x128] sm:$0xff]  ;;  %v52_v41 = vld [vmem:[%s1944_s0 + $0xf8] sm:$0xff]  ;;  %v49_v42 = vld [vmem:[%s1944_s0 + $0xe0] sm:$0xff] }
   0xf   :  { %256 = vmatprep.subr.mxu1 %v80_v25  ;;  %162 = vmatpush1.msra.mxu0 %v77_v26  ;;  %v50_v40 = vld [vmem:[%s1944_s0 + $0xe8] sm:$0xff]  ;;  %v51_v43 = vld [vmem:[%s1944_s0 + $0xf0] sm:$0xff]  ;;  %v45_v45 = vld [vmem:[%s1944_s0 + $0xc0] sm:$0xff] }
  0x10   :  { %257 = vmatpush1.msra.mxu1 %v79_v27  ;;  %163 = vmatprep.subr.mxu0 %v71_v28  ;;  %v43_v44 = vld [vmem:[%s1944_s0 + $0xb0] sm:$0xff]  ;;  %v42_v46 = vld [vmem:[%s1944_s0 + $0xa8] sm:$0xff]  ;;  %v44_v47 = vld [vmem:[%s1944_s0 + $0xb8] sm:$0xff] }
  0x11   :  { %258 = vmatprep.subr.mxu1 %v73_v29  ;;  %164 = vmatpush1.msra.mxu0 %v70_v30  ;;  %v36_v48 = vld [vmem:[%s1944_s0 + $0x78] sm:$0xff]  ;;  %v38_v49 = vld [vmem:[%s1944_s0 + $0x88] sm:$0xff]  ;;  %v35_v50 = vld [vmem:[%s1944_s0 + $0x70] sm:$0xff] }
  0x12   :  { %259 = vmatpush1.msra.mxu1 %v72_v31  ;;  %165 = vmatprep.subr.mxu0 %v64_v32  ;;  %v37_v51 = vld [vmem:[%s1944_s0 + $0x80] sm:$0xff]  ;;  %v31_v53 = vld [vmem:[%s1944_s0 + $0x50] sm:$0xff]  ;;  %v28_v54 = vld [vmem:[%s1944_s0 + $0x38] sm:$0xff] }
  0x13   :  { %260 = vmatprep.subr.mxu1 %v66_v33  ;;  %166 = vmatpush1.msra.mxu0 %v63_v34  ;;  %v29_v52 = vld [vmem:[%s1944_s0 + $0x40] sm:$0xff]  ;;  %v30_v55 = vld [vmem:[%s1944_s0 + $0x48] sm:$0xff]  ;;  %v24_v58 = vld [vmem:[%s1944_s0 + $0x18] sm:$0xff] }
  0x14   :  { %261 = vmatpush1.msra.mxu1 %v65_v35  ;;  %167 = vmatprep.subr.mxu0 %v57_v36  ;;  %v22_v56 = vld [vmem:[%s1944_s0 + $0x8] sm:$0xff]  ;;  %v21_v57 = vld [vmem:[%s1944_s0] sm:$0xff]  ;;  %v23_v60 = vld [vmem:[%s1944_s0 + $0x10] sm:$0xff] }
  0x15   :  { %262 = vmatprep.subr.mxu1 %v59_v37  ;;  %168 = vmatpush1.msra.mxu0 %v56_v38  ;;  %v1311_v59 = vld [vmem:[%s1945_s1] sm:$0xff]  ;;  %v124_v62 = vld [vmem:[%s1944_s0 + $0x338] sm:$0xff]  ;;  %v123_v63 = vld [vmem:[%s1944_s0 + $0x330] sm:$0xff] }
  0x16   :  { %263 = vmatpush1.msra.mxu1 %v58_v39  ;;  %169 = vmatprep.subr.mxu0 %v50_v40  ;;  %v117_v0 = vld [vmem:[%s1944_s0 + $0x300] sm:$0xff]  ;;  %v116_v2 = vld [vmem:[%s1944_s0 + $0x2f8] sm:$0xff]  ;;  %v110_v3 = vld [vmem:[%s1944_s0 + $0x2c8] sm:$0xff] }
  0x17   :  { %264 = vmatprep.subr.mxu1 %v52_v41  ;;  %170 = vmatpush1.msra.mxu0 %v49_v42  ;;  %v125_v1 = vld [vmem:[%s1944_s0 + $0x340] sm:$0xff]  ;;  %v118_v4 = vld [vmem:[%s1944_s0 + $0x308] sm:$0xff]  ;;  %v103_v6 = vld [vmem:[%s1944_s0 + $0x290] sm:$0xff] }
  0x18   :  { %265 = vmatpush1.msra.mxu1 %v51_v43  ;;  %171 = vmatprep.subr.mxu0 %v43_v44  ;;  %v109_v5 = vld [vmem:[%s1944_s0 + $0x2c0] sm:$0xff]  ;;  %v111_v7 = vld [vmem:[%s1944_s0 + $0x2d0] sm:$0xff]  ;;  %v102_v8 = vld [vmem:[%s1944_s0 + $0x288] sm:$0xff] }
  0x19   :  { %266 = vmatprep.subr.mxu1 %v45_v45  ;;  %172 = vmatpush1.msra.mxu0 %v42_v46 }
  0x1a   :  { %267 = vmatpush1.msra.mxu1 %v44_v47  ;;  %173 = vmatprep.subr.mxu0 %v36_v48 }
  0x1b   :  { %268 = vmatprep.subr.mxu1 %v38_v49  ;;  %174 = vmatpush1.msra.mxu0 %v35_v50 }
  0x1c   :  { %269 = vmatpush1.msra.mxu1 %v37_v51  ;;  %175 = vmatprep.subr.mxu0 %v29_v52 }
  0x1d   :  { %270 = vmatprep.subr.mxu1 %v31_v53  ;;  %176 = vmatpush1.msra.mxu0 %v28_v54 }
  0x1e   :  { %271 = vmatpush1.msra.mxu1 %v30_v55  ;;  %177 = vmatprep.subr.mxu0 %v22_v56 }
  0x1f   :  { %178 = vmatpush1.msra.mxu0 %v21_v57  ;;  %272 = vmatprep.subr.mxu1 %v24_v58 }
  0x20   :  { %970 = vmatmul.mubr.msk.f32.vlgmr.msra.gmra.mxu0 %vm131_vm0, %v1311_v59  ;;  %273 = vmatpush1.msra.mxu1 %v23_v60 }
  0x21   :  { %339 = vmatprep.subr.mxu0 %v124_v62  ;;  %1010 = vmatprep.subr.mxu1 %v1095_v61 }
  0x22   :  { %340 = vmatpush1.msra.mxu0 %v123_v63  ;;  %975 = vmatmul.mubr.msk.f32.vlgmr.msra.gmra.mxu1 %vm131_vm0, %v1311_v59 }
  0x23   :  { %341 = vmatprep.subr.mxu0 %v117_v0  ;;  %1011 = vmatpush3.msra.mxu1 %v125_v1 }
  0x24   :  { %342 = vmatpush1.msra.mxu0 %v116_v2  ;;  %1012 = vmatprep.subr.mxu1 %v1095_v61 }
  0x25   :  { %343 = vmatprep.subr.mxu0 %v110_v3 }
  0x26   :  { %10 = vsyncpa [#allocation3], 0  ;;  %1013 = vmatpush3.msra.mxu1 %v118_v4  ;;  %344 = vmatpush1.msra.mxu0 %v109_v5  ;;  %v96_v9 = vld [vmem:[%s1944_s0 + $0x258] sm:$0xff]  ;;  %v95_v11 = vld [vmem:[%s1944_s0 + $0x250] sm:$0xff]  ;;  %vm1096_vm1 = vmmov 0   ;;  %vm527_vm2 = vcmask 130048  }
  0x27   :  { %1014 = vmatprep.subr.mxu1 %v1095_v61  ;;  %345 = vmatprep.subr.mxu0 %v103_v6  ;;  %v104_v10 = vld [vmem:[%s1944_s0 + $0x298] sm:$0xff]  ;;  %v89_v12 = vld [vmem:[%s1944_s0 + $0x220] sm:$0xff]  ;;  %v1377_v14 = vld [vmem:[%s1945_s1 + $0x8] sm:$0xff]  ;;  %s1098_s14 = smov [#allocation2]  }
  0x28   :  { %1015 = vmatpush3.msra.mxu1 %v111_v7  ;;  %346 = vmatpush1.msra.mxu0 %v102_v8  ;;  %v97_v13 = vld [vmem:[%s1944_s0 + $0x260] sm:$0xff]  ;;  %v88_v15 = vld [vmem:[%s1944_s0 + $0x218] sm:$0xff]  ;;  %v90_v16 = vld [vmem:[%s1944_s0 + $0x228] sm:$0xff]  ;;  %s959_s15 = sshll.u32 %s1098_s14, 4  ;;  %s960_s15 = int_to_ptr.vmem [resolvable:$true] %s959_s15 }
  0x29   :  { %1016 = vmatprep.subr.mxu1 %v1095_v61  ;;  %347 = vmatprep.subr.mxu0 %v96_v9  ;;  %v82_v17 = vld [vmem:[%s1944_s0 + $0x1e8] sm:$0xff]  ;;  %v81_v18 = vld [vmem:[%s1944_s0 + $0x1e0] sm:$0xff]  ;;  %v75_v19 = vld [vmem:[%s1944_s0 + $0x1b0] sm:$0xff]  ;;  %p1078_p1 = scmp.lt.s32.totalorder %s960_s15, %s960_s15 }
  0x2a   :  { %1017 = vmatpush3.msra.mxu1 %v104_v10  ;;  %348 = vmatpush1.msra.mxu0 %v95_v11  ;;  %v83_v20 = vld [vmem:[%s1944_s0 + $0x1f0] sm:$0xff]  ;;  %v74_v22 = vld [vmem:[%s1944_s0 + $0x1a8] sm:$0xff]  ;;  %v68_v23 = vld [vmem:[%s1944_s0 + $0x178] sm:$0xff] }
  0x2b   :  { %1018 = vmatprep.subr.mxu1 %v1095_v61  ;;  %217 = vmatprep.mubr.f32.mxu0 %v1095_v61  ;;  %v1406_v21 = vld [vmem:[%s1945_s1 + $0x10] sm:$0xff]  ;;  %v76_v24 = vld [vmem:[%s1944_s0 + $0x1b8] sm:$0xff]  ;;  %v61_v26 = vld [vmem:[%s1944_s0 + $0x140] sm:$0xff] }
  0x2c   :  { %349 = vmatprep.subr.mxu0 %v89_v12  ;;  %1019 = vmatpush3.msra.mxu1 %v97_v13  ;;  %v67_v25 = vld [vmem:[%s1944_s0 + $0x170] sm:$0xff]  ;;  %v69_v27 = vld [vmem:[%s1944_s0 + $0x180] sm:$0xff]  ;;  %v1436_v28 = vld [vmem:[%s1945_s1 + $0x18] sm:$0xff] }
  0x2d   :  { %971 = vmatmul.mubr.msk.f32.gmra.mxu0 %vm131_vm0, %v1377_v14  ;;  %1020 = vmatprep.subr.mxu1 %v1095_v61  ;;  %v60_v29 = vld [vmem:[%s1944_s0 + $0x138] sm:$0xff]  ;;  %v54_v30 = vld [vmem:[%s1944_s0 + $0x108] sm:$0xff]  ;;  %v53_v32 = vld [vmem:[%s1944_s0 + $0x100] sm:$0xff] }
  0x2e   :  { %350 = vmatpush1.msra.mxu0 %v88_v15  ;;  %1021 = vmatpush3.msra.mxu1 %v90_v16  ;;  %v62_v31 = vld [vmem:[%s1944_s0 + $0x148] sm:$0xff]  ;;  %v47_v33 = vld [vmem:[%s1944_s0 + $0xd0] sm:$0xff]  ;;  %v130_v35 = vld [vmem:[%s1945_s1 + $0x20] sm:$0xff] }
  0x2f   :  { %351 = vmatprep.subr.mxu0 %v82_v17  ;;  %1022 = vmatprep.subr.mxu1 %v1095_v61  ;;  %v55_v34 = vld [vmem:[%s1944_s0 + $0x110] sm:$0xff]  ;;  %v46_v36 = vld [vmem:[%s1944_s0 + $0xc8] sm:$0xff]  ;;  %v40_v37 = vld [vmem:[%s1944_s0 + $0x98] sm:$0xff] }
  0x30   :  { %352 = vmatpush1.msra.mxu0 %v81_v18  ;;  %223 = vmatprep.mubr.f32.mxu0 %v1095_v61  ;;  %v48_v38 = vld [vmem:[%s1944_s0 + $0xd8] sm:$0xff]  ;;  %v39_v39 = vld [vmem:[%s1944_s0 + $0x90] sm:$0xff]  ;;  %v33_v40 = vld [vmem:[%s1944_s0 + $0x60] sm:$0xff] }
  0x31   :  { %312 = vmatprep.mubr.f32.mxu1 %v1095_v61  ;;  %353 = vmatprep.subr.mxu0 %v75_v19  ;;  %v41_v41 = vld [vmem:[%s1944_s0 + $0xa0] sm:$0xff]  ;;  %v32_v42 = vld [vmem:[%s1944_s0 + $0x58] sm:$0xff]  ;;  %v26_v43 = vld [vmem:[%s1944_s0 + $0x28] sm:$0xff] }
  0x32   :  { %1023 = vmatpush3.msra.mxu1 %v83_v20  ;;  %972 = vmatmul.mubr.msk.f32.gmra.mxu0 %vm131_vm0, %v1406_v21  ;;  %v34_v44 = vld [vmem:[%s1944_s0 + $0x68] sm:$0xff]  ;;  %v25_v45 = vld [vmem:[%s1944_s0 + $0x20] sm:$0xff]  ;;  %v27_v46 = vld [vmem:[%s1944_s0 + $0x30] sm:$0xff] }
  0x33   :  { %976 = vmatmul.mubr.msk.f32.gmra.mxu1 %vm131_vm0, %v1377_v14  ;;  %354 = vmatpush1.msra.mxu0 %v74_v22 }
  0x34   :  { %1024 = vmatprep.subr.mxu1 %v1095_v61  ;;  %355 = vmatprep.subr.mxu0 %v68_v23 }
  0x35   :  { %1025 = vmatpush3.msra.mxu1 %v76_v24  ;;  %356 = vmatpush1.msra.mxu0 %v67_v25 }
  0x36   :  { %1026 = vmatprep.subr.mxu1 %v1095_v61  ;;  %229 = vmatprep.mubr.f32.mxu0 %v1095_v61 }
  0x37   :  { %318 = vmatprep.mubr.f32.mxu1 %v1095_v61  ;;  %357 = vmatprep.subr.mxu0 %v61_v26 }
  0x38   :  { %1027 = vmatpush3.msra.mxu1 %v69_v27  ;;  %973 = vmatmul.mubr.msk.f32.gmra.mxu0 %vm131_vm0, %v1436_v28 }
  0x39   :  { %977 = vmatmul.mubr.msk.f32.gmra.mxu1 %vm131_vm0, %v1406_v21  ;;  %358 = vmatpush1.msra.mxu0 %v60_v29 }
  0x3a   :  { %1028 = vmatprep.subr.mxu1 %v1095_v61  ;;  %359 = vmatprep.subr.mxu0 %v54_v30 }
  0x3b   :  { %1029 = vmatpush3.msra.mxu1 %v62_v31  ;;  %360 = vmatpush1.msra.mxu0 %v53_v32 }
  0x3c   :  { %1030 = vmatprep.subr.mxu1 %v1095_v61  ;;  %235 = vmatprep.mubr.f32.mxu0 %v1095_v61 }
  0x3d   :  { %324 = vmatprep.mubr.f32.mxu1 %v1095_v61  ;;  %361 = vmatprep.subr.mxu0 %v47_v33 }
  0x3e   :  { %1031 = vmatpush3.msra.mxu1 %v55_v34  ;;  %974 = vmatmul.mubr.msk.f32.gmra.mxu0 %vm131_vm0, %v130_v35 }
  0x3f   :  { %978 = vmatmul.mubr.msk.f32.gmra.mxu1 %vm131_vm0, %v1436_v28  ;;  %362 = vmatpush1.msra.mxu0 %v46_v36 }
  0x40   :  { %1032 = vmatprep.subr.mxu1 %v1095_v61  ;;  %363 = vmatprep.subr.mxu0 %v40_v37 }
  0x41   :  { %1033 = vmatpush3.msra.mxu1 %v48_v38  ;;  %364 = vmatpush1.msra.mxu0 %v39_v39 }
  0x42   :  { %1034 = vmatprep.subr.mxu1 %v1095_v61  ;;  %330 = vmatprep.mubr.f32.mxu1 %v1095_v61 }
  0x43   :  { %365 = vmatprep.subr.mxu0 %v33_v40  ;;  %1035 = vmatpush3.msra.mxu1 %v41_v41 }
  0x44   :  { %979 = vmatmul.mubr.msk.f32.gmra.mxu1 %vm131_vm0, %v130_v35  ;;  %366 = vmatpush1.msra.mxu0 %v32_v42 }
  0x45   :  { %1036 = vmatprep.subr.mxu1 %v1095_v61  ;;  %367 = vmatprep.subr.mxu0 %v26_v43 }
  0x46   :  { %1037 = vmatpush3.msra.mxu1 %v34_v44  ;;  %368 = vmatpush1.msra.mxu0 %v25_v45 }
  0x47   :  { %401 = vmatprep.mubr.f32.mxu0 %v1095_v61  ;;  %1038 = vmatprep.subr.mxu1 %v1095_v61 }
  0x48   :  { %980 = vmatmul.mubr.msk.f32.vlgmr.msra.gmra.mxu0 %vm131_vm0, %v1311_v59  ;;  %1039 = vmatpush3.msra.mxu1 %v27_v46 }
  0x49   :  { %1040 = vmatprep.mubr.msk.f32.mxu1 %vm1096_vm1, %v1095_v61  ;;  %407 = vmatprep.mubr.f32.mxu0 %v1095_v61 }
  0x4a   :  { %1041 = vmatmul.mubr.msk.f32.vlgmr.msra.gmra.mxu1 %vm131_vm0, %v1311_v59 }
  0x4b   :  { %1043 = vmatprep.mubr.msk.f32.mxu1 %vm1096_vm1, %v1095_v61 }
  0x4c   :  { %981 = vmatmul.mubr.msk.f32.gmra.mxu0 %vm131_vm0, %v1377_v14 }
  0x4d   :  { %413 = vmatprep.mubr.f32.mxu0 %v1095_v61 }
  0x4e   :  { %1044 = vmatmul.mubr.msk.f32.gmra.mxu1 %vm131_vm0, %v1377_v14 }
  0x4f   :  { %1046 = vmatprep.mubr.msk.f32.mxu1 %vm1096_vm1, %v1095_v61 }
  0x50   :  { %982 = vmatmul.mubr.msk.f32.gmra.mxu0 %vm131_vm0, %v1406_v21 }
  0x51   :  { %419 = vmatprep.mubr.f32.mxu0 %v1095_v61 }
  0x52   :  { %1047 = vmatmul.mubr.msk.f32.gmra.mxu1 %vm131_vm0, %v1406_v21 }
  0x53   :  { %1049 = vmatprep.mubr.msk.f32.mxu1 %vm1096_vm1, %v1095_v61 }
  0x54   :  { %983 = vmatmul.mubr.msk.f32.gmra.mxu0 %vm131_vm0, %v1436_v28 }
  0x55   :  { %425 = vmatprep.mubr.f32.mxu0 %v1095_v61 }
  0x56   :  { %1050 = vmatmul.mubr.msk.f32.gmra.mxu1 %vm131_vm0, %v1436_v28 }
  0x57   :  { %1052 = vmatprep.mubr.msk.f32.mxu1 %vm1096_vm1, %v1095_v61 }
  0x58   :  { %984 = vmatmul.mubr.msk.f32.gmra.mxu0 %vm131_vm0, %v130_v35 }
  0x5a   :  { %1053 = vmatmul.mubr.msk.f32.gmra.mxu1 %vm131_vm0, %v130_v35 }
  0xe0   :  { %v1545_v47 = vpop.f32.mrf.mxu0 }
  0xe2   :  { %v1547_v48 = vpop.f32.mrf.mxu0  ;;  %v1549_v49 = vpop.f32.mrf.mxu1 }
  0xe3   :  { %v522_v61 = vadd.f32 %v1547_v48, %v1545_v47 }
  0xe4   :  { %v1555_v52 = vpop.f32.mrf.mxu1 }
  0xe5   :  { %v523_v1 = vadd.f32 %v522_v61, %v1549_v49 }
  0xe7   :  { %v524_v7 = vadd.f32 %v523_v1, %v1555_v52 }
  0xed   :  { %v1551_v50 = vpop.f32.mrf.mxu0 }
  0xef   :  { %v1553_v51 = vpop.f32.mrf.mxu0 }
  0xf0   :  { %v532_v2 = vadd.f32 %v1553_v51, %v1551_v50 }
  0xf2   :  { %v1557_v53 = vpop.f32.mrf.mxu0 }
  0xf3   :  { %v1559_v54 = vpop.f32.mrf.mxu1 }
  0xf4   :  { %v1563_v56 = vpop.f32.mrf.mxu0  ;;  %v533_v8 = vadd.f32 %v532_v2, %v1559_v54 }
  0xf5   :  { %v1561_v55 = vpop.f32.mrf.mxu1  ;;  %1952 = vst [vmem:[#allocation5_spill] sm:$0xff] %v1563_v56  ;;  %v541_v4 = vadd.f32 %v1563_v56, %v1557_v53 }
  0xf6   :  { %v534_v14 = vadd.f32 %v533_v8, %v1561_v55 }
  0xf8   :  { %v1567_v58 = vpop.f32.mrf.mxu0 }
  0xf9   :  { %v1565_v57 = vpop.f32.mrf.mxu1 }
  0xfa   :  { %v1571_v60 = vpop.f32.mrf.mxu0  ;;  %v542_v11 = vadd.f32 %v541_v4, %v1565_v57 }
  0xfb   :  { %v1569_v59 = vpop.f32.mrf.mxu1  ;;  %1953 = vst [vmem:[#allocation6_spill] sm:$0xff] %v1571_v60  ;;  %v550_v15 = vadd.f32 %v1571_v60, %v1567_v58 }
  0xfc   :  { %v543_v22 = vadd.f32 %v542_v11, %v1569_v59 }
  0xfe   :  { %v1579_v0 = vpop.f32.mrf.mxu0 }
  0xff   :  { %v1575_v62 = vpop.f32.mrf.mxu1 }
 0x100   :  { %v1588_v5 = vpop.f32.mrf.mxu0  ;;  %v551_v25 = vadd.f32 %v550_v15, %v1575_v62 }
 0x101   :  { %v1577_v63 = vpop.f32.mrf.mxu1  ;;  %v559_v26 = vadd.f32 %v1588_v5, %v1579_v0 }
 0x102   :  { %v552_v35 = vadd.f32 %v551_v25, %v1577_v63 }
 0x104   :  { %v1584_v3 = vpop.f32.mrf.mxu1 }
 0x105   :  { %v560_v36 = vadd.f32 %v559_v26, %v1584_v3 }
 0x106   :  { %v1590_v6 = vpop.f32.mrf.mxu1 }
 0x107   :  { %v561_v45 = vadd.f32 %v560_v36, %v1590_v6 }
 0x108   :  { %v1594_v9 = vpop.f32.mrf.mxu0 }
 0x109   :  { %v525_v10 = vadd.f32 %v524_v7, %v1594_v9 }
 0x10a   :  { %v1598_v12 = vpop.f32.mrf.mxu1  ;;  %v1600_v13 = vpop.f32.mrf.mxu0 }
 0x10b   :  { %v526_v16 = vadd.f32 %v525_v10, %v1600_v13  ;;  %v528_v17 = vsel %vm527_vm2, %v1598_v12, 0.0 }
 0x10c   :  { %v1042_v18 = vpop.f32.mrf.mxu1  ;;  %v1608_v19 = vpop.f32.mrf.mxu0 }
 0x10d   :  { %v535_v20 = vadd.f32 %v534_v14, %v1608_v19  ;;  %v529_v21 = vadd.f32 %v528_v17, %v526_v16 }
 0x10e   :  { %v1612_v23 = vpop.f32.mrf.mxu1  ;;  %v1614_v24 = vpop.f32.mrf.mxu0 }
 0x10f   :  { %530 = vadd.xlane.f32.xlu0 %v529_v21  ;;  %v536_v27 = vadd.f32 %v535_v20, %v1614_v24  ;;  %v537_v28 = vsel %vm527_vm2, %v1612_v23, 0.0 }
 0x110   :  { %v1045_v29 = vpop.f32.mrf.mxu1  ;;  %v1622_v30 = vpop.f32.mrf.mxu0 }
 0x111   :  { %v544_v31 = vadd.f32 %v543_v22, %v1622_v30  ;;  %v538_v32 = vadd.f32 %v537_v28, %v536_v27 }
 0x112   :  { %v1625_v33 = vpop.f32.mrf.mxu0  ;;  %v1627_v34 = vpop.f32.mrf.mxu1 }
 0x113   :  { %539 = vadd.xlane.f32.xlu0 %v538_v32  ;;  %v545_v37 = vadd.f32 %v544_v31, %v1625_v33  ;;  %v546_v38 = vsel %vm527_vm2, %v1627_v34, 0.0 }
 0x114   :  { %v1634_v39 = vpop.f32.mrf.mxu0  ;;  %v1048_v40 = vpop.f32.mrf.mxu1 }
 0x115   :  { %v553_v41 = vadd.f32 %v552_v35, %v1634_v39  ;;  %v547_v42 = vadd.f32 %v546_v38, %v545_v37 }
 0x116   :  { %v1637_v43 = vpop.f32.mrf.mxu0  ;;  %v1639_v44 = vpop.f32.mrf.mxu1 }
 0x117   :  { %548 = vadd.xlane.f32.xlu1 %v547_v42  ;;  %v554_v46 = vadd.f32 %v553_v41, %v1637_v43  ;;  %v555_v61 = vsel %vm527_vm2, %v1639_v44, 0.0 }
 0x118   :  { %v1645_v1 = vpop.f32.mrf.mxu0  ;;  %v1051_v2 = vpop.f32.mrf.mxu1 }
 0x119   :  { %v562_v4 = vadd.f32 %v561_v45, %v1645_v1  ;;  %v556_v7 = vadd.f32 %v555_v61, %v554_v46 }
 0x11a   :  { %v1648_v8 = vpop.f32.mrf.mxu0  ;;  %v1650_v10 = vpop.f32.mrf.mxu1 }
 0x11b   :  { %v563_v11 = vadd.f32 %v562_v4, %v1648_v8  ;;  %557 = vadd.xlane.f32.xlu1 %v556_v7  ;;  %v564_v14 = vsel %vm527_vm2, %v1650_v10, 0.0 }
 0x11c   :  { %v1054_v15 = vpop.f32.mrf.mxu1 }
 0x11d   :  { %v565_v16 = vadd.f32 %v564_v14, %v563_v11 }
 0x11f   :  { %566 = vadd.xlane.f32.xlu0 %v565_v16 }
 0x198   :  { %v531_v17 = vpop.xlane.xlu0 %530 }
 0x199   :  { %v1655_v18 = vmul.f32 0.0012755102, %v531_v17 }
 0x19b   :  { %v574_v20 = vsub.f32 %v1545_v47, %v1655_v18  ;;  %v575_v21 = vsub.f32 %v1547_v48, %v1655_v18  ;;  %v576_v22 = vsub.f32 %v1549_v49, %v1655_v18  ;;  %v577_v26 = vsub.f32 %v1555_v52, %v1655_v18 }
 0x19c   :  { %v540_v25 = vpop.xlane.xlu0 %539  ;;  %v580_v27 = vsub.f32 %v1598_v12, %v1655_v18  ;;  %v578_v32 = vsub.f32 %v1594_v9, %v1655_v18  ;;  %v579_v35 = vsub.f32 %v1600_v13, %v1655_v18 }
 0x19d   :  { %v1667_v28 = vmul.f32 0.0012755102, %v540_v25  ;;  %v609_v29 = vmul.f32 %v574_v20, %v574_v20  ;;  %v610_v31 = vmul.f32 %v575_v21, %v575_v21  ;;  %v611_v36 = vmul.f32 %v576_v22, %v576_v22 }
 0x19e   :  { %v615_v37 = vmul.f32 %v580_v27, %v580_v27  ;;  %v612_v45 = vmul.f32 %v577_v26, %v577_v26  ;;  %v613_v11 = vmul.f32 %v578_v32, %v578_v32  ;;  %v614_v17 = vmul.f32 %v579_v35, %v579_v35 }
 0x19f   :  { %v644_v38 = vadd.f32 %v610_v31, %v609_v29  ;;  %v581_v40 = vsub.f32 %v1551_v50, %v1667_v28  ;;  %v582_v41 = vsub.f32 %v1553_v51, %v1667_v28  ;;  %v583_v46 = vsub.f32 %v1559_v54, %v1667_v28 }
 0x1a0   :  { %v549_v42 = vpop.xlane.xlu1 %548  ;;  %v584_v4 = vsub.f32 %v1561_v55, %v1667_v28  ;;  %v585_v14 = vsub.f32 %v1608_v19, %v1667_v28  ;;  %v587_v15 = vsub.f32 %v1612_v23, %v1667_v28  ;;  %v649_v21 = vsel %vm527_vm2, %v615_v37, 0.0 }
 0x1a1   :  { %v1679_v61 = vmul.f32 0.0012755102, %v549_v42  ;;  %v645_v2 = vadd.f32 %v644_v38, %v611_v36  ;;  %v616_v7 = vmul.f32 %v581_v40, %v581_v40  ;;  %v617_v16 = vmul.f32 %v582_v41, %v582_v41 }
 0x1a2   :  { %v586_v26 = vsub.f32 %v1614_v24, %v1667_v28  ;;  %v618_v27 = vmul.f32 %v583_v46, %v583_v46  ;;  %v619_v38 = vmul.f32 %v584_v4, %v584_v4  ;;  %v620_v37 = vmul.f32 %v585_v14, %v585_v14 }
 0x1a3   :  { %v646_v20 = vadd.f32 %v645_v2, %v612_v45  ;;  %v588_v22 = vsub.f32 %v1557_v53, %v1679_v61  ;;  %v653_v29 = vadd.f32 %v617_v16, %v616_v7  ;;  %v589_v31 = vsub.f32 %v1563_v56, %v1679_v61 }
 0x1a4   :  { %v558_v25 = vpop.xlane.xlu1 %557  ;;  %v590_v35 = vsub.f32 %v1565_v57, %v1679_v61  ;;  %v622_v40 = vmul.f32 %v587_v15, %v587_v15  ;;  %v591_v2 = vsub.f32 %v1569_v59, %v1679_v61  ;;  %v592_v46 = vsub.f32 %v1622_v30, %v1679_v61 }
 0x1a5   :  { %v1694_v32 = vmul.f32 0.0012755102, %v558_v25  ;;  %v647_v36 = vadd.f32 %v646_v20, %v613_v11  ;;  %v654_v41 = vadd.f32 %v653_v29, %v618_v27  ;;  %v623_v42 = vmul.f32 %v588_v22, %v588_v22 }
 0x1a6   :  { %v624_v7 = vmul.f32 %v589_v31, %v589_v31  ;;  %v621_v25 = vmul.f32 %v586_v26, %v586_v26  ;;  %v593_v4 = vsub.f32 %v1625_v33, %v1679_v61  ;;  %v594_v11 = vsub.f32 %v1627_v34, %v1679_v61 }
 0x1a7   :  { %v648_v45 = vadd.f32 %v647_v36, %v614_v17  ;;  %v655_v56 = vadd.f32 %v654_v41, %v619_v38  ;;  %v625_v15 = vmul.f32 %v590_v35, %v590_v35  ;;  %v595_v17 = vsub.f32 %v1567_v58, %v1694_v32 }
 0x1a8   :  { %v567_v16 = vpop.xlane.xlu0 %566  ;;  %v662_v20 = vadd.f32 %v624_v7, %v623_v42  ;;  %v658_v27 = vsel %vm527_vm2, %v622_v40, 0.0  ;;  %v596_v29 = vsub.f32 %v1571_v60, %v1694_v32  ;;  %v597_v26 = vsub.f32 %v1575_v62, %v1694_v32 }
 0x1a9   :  { %v650_v14 = vadd.f32 %v649_v21, %v648_v45  ;;  %v656_v22 = vadd.f32 %v655_v56, %v620_v37  ;;  %v1713_v31 = vmul.f32 0.0012755102, %v567_v16  ;;  %v626_v36 = vmul.f32 %v591_v2, %v591_v2 }
 0x1aa   :  { %v627_v38 = vmul.f32 %v592_v46, %v592_v46  ;;  %v663_v21 = vadd.f32 %v662_v20, %v625_v15  ;;  %v598_v41 = vsub.f32 %v1577_v63, %v1694_v32  ;;  %v630_v42 = vmul.f32 %v595_v17, %v595_v17 }
 0x1ab   :  { %651 = vadd.xlane.f32.xlu1 %v650_v14  ;;  %v657_v35 = vadd.f32 %v656_v22, %v621_v25  ;;  %v631_v56 = vmul.f32 %v596_v29, %v596_v29  ;;  %v628_v37 = vmul.f32 %v593_v4, %v593_v4  ;;  %v629_v40 = vmul.f32 %v594_v11, %v594_v11 }
 0x1ac   :  { %v664_v45 = vadd.f32 %v663_v21, %v626_v36  ;;  %v599_v7 = vsub.f32 %v1634_v39, %v1694_v32  ;;  %v600_v16 = vsub.f32 %v1637_v43, %v1694_v32  ;;  %v632_v14 = vmul.f32 %v597_v26, %v597_v26 }
 0x1ad   :  { %v659_v60 = vadd.f32 %v658_v27, %v657_v35  ;;  %v671_v2 = vadd.f32 %v631_v56, %v630_v42  ;;  %v601_v25 = vsub.f32 %v1639_v44, %v1694_v32  ;;  %v602_v15 = vsub.f32 %v1579_v0, %v1713_v31 }
 0x1ae   :  { %v665_v46 = vadd.f32 %v664_v45, %v627_v38  ;;  %v603_v4 = vsub.f32 %v1588_v5, %v1713_v31  ;;  %v633_v11 = vmul.f32 %v598_v41, %v598_v41  ;;  %v604_v17 = vsub.f32 %v1584_v3, %v1713_v31 }
 0x1af   :  { %660 = vadd.xlane.f32.xlu0 %v659_v60  ;;  %v672_v20 = vadd.f32 %v671_v2, %v632_v14  ;;  %v667_v27 = vsel %vm527_vm2, %v629_v40, 0.0  ;;  %v637_v29 = vmul.f32 %v602_v15, %v602_v15  ;;  %v634_v26 = vmul.f32 %v599_v7, %v599_v7 }
 0x1b0   :  { %v666_v22 = vadd.f32 %v665_v46, %v628_v37  ;;  %v605_v38 = vsub.f32 %v1590_v6, %v1713_v31  ;;  %v638_v21 = vmul.f32 %v603_v4, %v603_v4  ;;  %v635_v42 = vmul.f32 %v600_v16, %v600_v16 }
 0x1b1   :  { %v673_v36 = vadd.f32 %v672_v20, %v633_v11  ;;  %v636_v56 = vmul.f32 %v601_v25, %v601_v25  ;;  %v606_v60 = vsub.f32 %v1645_v1, %v1713_v31  ;;  %v639_v41 = vmul.f32 %v604_v17, %v604_v17 }
 0x1b2   :  { %v668_v35 = vadd.f32 %v667_v27, %v666_v22  ;;  %v680_v14 = vadd.f32 %v638_v21, %v637_v29  ;;  %v608_v37 = vsub.f32 %v1650_v10, %v1713_v31  ;;  %v607_v7 = vsub.f32 %v1648_v8, %v1713_v31 }
 0x1b3   :  { %v674_v45 = vadd.f32 %v673_v36, %v634_v26  ;;  %v640_v2 = vmul.f32 %v605_v38, %v605_v38  ;;  %v676_v15 = vsel %vm527_vm2, %v636_v56, 0.0  ;;  %v641_v25 = vmul.f32 %v606_v60, %v606_v60 }
 0x1b4   :  { %669 = vadd.xlane.f32.xlu1 %v668_v35  ;;  %v681_v46 = vadd.f32 %v680_v14, %v639_v41  ;;  %v643_v11 = vmul.f32 %v608_v37, %v608_v37  ;;  %v642_v20 = vmul.f32 %v607_v7, %v607_v7  ;;  %v1097_v26 = vmov 0  }
 0x1b5   :  { %v675_v40 = vadd.f32 %v674_v45, %v635_v42  ;;  %1061 = vset.pattern.permute.xlu0 %v1097_v26  ;;  %1062 = vset.pattern.permute.xlu1 %v1097_v26  ;;  %v696_v26 = vld [vmem:[%s1946_s2 + $0x10] sm:$0xff] }
 0x1b6   :  { %v682_v4 = vadd.f32 %v681_v46, %v640_v2  ;;  %v685_v27 = vsel %vm527_vm2, %v643_v11, 0.0 }
 0x1b7   :  { %v677_v16 = vadd.f32 %v676_v15, %v675_v40  ;;  %v694_v40 = vld [vmem:[%s1946_s2] sm:$0xff] }
 0x1b8   :  { %v683_v17 = vadd.f32 %v682_v4, %v641_v25 }
 0x1b9   :  { %678 = vadd.xlane.f32.xlu0 %v677_v16  ;;  %v695_v16 = vld [vmem:[%s1946_s2 + $0x8] sm:$0xff] }
 0x1ba   :  { %v684_v22 = vadd.f32 %v683_v17, %v642_v20 }
 0x1bc   :  { %v686_v29 = vadd.f32 %v685_v27, %v684_v22  ;;  %v714_v22 = vld [vmem:[%s1947_s3] sm:$0xff] }
 0x1be   :  { %687 = vadd.xlane.f32.xlu1 %v686_v29 }
 0x234   :  { %v652_v36 = vpop.xlane.xlu1 %651 }
 0x235   :  { %v689_v38 = vmul.f32 0.0012755102, %v652_v36 }
 0x237   :  { %v699_v21 = vadd.f32 0.001, %v689_v38 }
 0x238   :  { %v661_v35 = vpop.xlane.xlu0 %660 }
 0x239   :  { %1063 = vrsqrt.f32 %v699_v21  ;;  %v690_v42 = vmul.f32 0.0012755102, %v661_v35 }
 0x23b   :  { %v700_v56 = vadd.f32 0.001, %v690_v42  ;;  %v698_v42 = vld [vmem:[%s1946_s2 + $0x20] sm:$0xff] }
 0x23d   :  { %1065 = vrsqrt.f32 %v700_v56  ;;  %v670_v45 = vpop.xlane.xlu1 %669  ;;  %v697_v56 = vld [vmem:[%s1946_s2 + $0x18] sm:$0xff] }
 0x23e   :  { %v691_v60 = vmul.f32 0.0012755102, %v670_v45 }
 0x240   :  { %v701_v41 = vadd.f32 0.001, %v691_v60 }
 0x242   :  { %v679_v14 = vpop.xlane.xlu0 %678  ;;  %1067 = vrsqrt.f32 %v701_v41 }
 0x243   :  { %v692_v37 = vmul.f32 0.0012755102, %v679_v14  ;;  %v718_v14 = vld [vmem:[%s1947_s3 + $0x20] sm:$0xff] }
 0x245   :  { %v702_v46 = vadd.f32 0.001, %v692_v37  ;;  %v716_v37 = vld [vmem:[%s1947_s3 + $0x10] sm:$0xff] }
 0x246   :  { %v1064_v7 = vpop.eup %1063 }
 0x247   :  { %v709_v2 = vmul.f32 %v1064_v7, %v694_v40  ;;  %v688_v15 = vpop.xlane.xlu1 %687  ;;  %1069 = vrsqrt.f32 %v702_v46 }
 0x248   :  { %v693_v25 = vmul.f32 0.0012755102, %v688_v15 }
 0x249   :  { %731 = vperm.xlu0 %1061, %v709_v2   ;;  %v719_v17 = vmul.f32 %v709_v2, %v1655_v18  ;;  %v715_v18 = vld [vmem:[%s1947_s3 + $0x8] sm:$0xff] }
 0x24a   :  { %v1066_v4 = vpop.eup %1065  ;;  %v703_v11 = vadd.f32 0.001, %v693_v25 }
 0x24b   :  { %v710_v20 = vmul.f32 %v1066_v4, %v695_v16  ;;  %v724_v27 = vsub.f32 %v714_v22, %v719_v17 }
 0x24c   :  { %1071 = vrsqrt.f32 %v703_v11 }
 0x24d   :  { %736 = vperm.xlu1 %1062, %v710_v20   ;;  %v720_v38 = vmul.f32 %v710_v20, %v1667_v28 }
 0x24f   :  { %v1068_v29 = vpop.eup %1067  ;;  %v725_v21 = vsub.f32 %v715_v18, %v720_v38 }
 0x250   :  { %v711_v36 = vmul.f32 %v1068_v29, %v696_v26 }
 0x251   :  { %791 = vperm.xlu1 %1062, %v724_v27  }
 0x252   :  { %v721_v28 = vmul.f32 %v711_v36, %v1679_v61  ;;  %v717_v61 = vld [vmem:[%s1947_s3 + $0x18] sm:$0xff] }
 0x254   :  { %v1070_v35 = vpop.eup %1069  ;;  %v726_v2 = vsub.f32 %v716_v37, %v721_v28 }
 0x255   :  { %741 = vperm.xlu1 %1062, %v711_v36   ;;  %v712_v41 = vmul.f32 %v1070_v35, %v697_v56 }
 0x257   :  { %v722_v46 = vmul.f32 %v712_v41, %v1694_v32  ;;  %v849_v32 = vld [vmem:[%s1948_s4] sm:$0xff] }
 0x259   :  { %796 = vperm.xlu1 %1062, %v725_v21   ;;  %v1072_v45 = vpop.eup %1071  ;;  %v727_v15 = vsub.f32 %v717_v61, %v722_v46  ;;  %v856_v61 = vld [vmem:[%s1948_s4 + $0x38] sm:$0xff] }
 0x25a   :  { %v713_v60 = vmul.f32 %v1072_v45, %v698_v42 }
 0x25c   :  { %v723_v40 = vmul.f32 %v713_v60, %v1713_v31 }
 0x25d   :  { %746 = vperm.xlu1 %1062, %v712_v41  }
 0x25e   :  { %v728_v7 = vsub.f32 %v718_v14, %v723_v40 }
 0x260   :  { %811 = vperm.xlu0 %1061, %v728_v7  }
 0x261   :  { %801 = vperm.xlu1 %1062, %v726_v2  }
 0x265   :  { %751 = vperm.xlu1 %1062, %v713_v60  }
 0x269   :  { %806 = vperm.xlu1 %1062, %v727_v15  }
 0x2c4   :  { %v732_v16 = vpop.permute.xlu0 %731 }
 0x2c5   :  { %v754_v4 = vmul.f32 %v732_v16, %v1545_v47  ;;  %v755_v31 = vmul.f32 %v732_v16, %v1547_v48  ;;  %v756_v11 = vmul.f32 %v732_v16, %v1549_v49  ;;  %v757_v20 = vmul.f32 %v732_v16, %v1555_v52  ;;  %v850_v47 = vld [vmem:[%s1948_s4 + $0x8] sm:$0xff]  ;;  %v851_v48 = vld [vmem:[%s1948_s4 + $0x10] sm:$0xff]  ;;  %v852_v49 = vld [vmem:[%s1948_s4 + $0x18] sm:$0xff] }
 0x2c6   :  { %v758_v17 = vmul.f32 %v732_v16, %v1594_v9  ;;  %v759_v22 = vmul.f32 %v732_v16, %v1600_v13  ;;  %v760_v27 = vmul.f32 %v732_v16, %v1598_v12  ;;  %v853_v9 = vld [vmem:[%s1948_s4 + $0x20] sm:$0xff]  ;;  %v854_v12 = vld [vmem:[%s1948_s4 + $0x28] sm:$0xff]  ;;  %v855_v13 = vld [vmem:[%s1948_s4 + $0x30] sm:$0xff] }
 0x2c8   :  { %v737_v25 = vpop.permute.xlu1 %736 }
 0x2c9   :  { %v761_v40 = vmul.f32 %v737_v25, %v1551_v50  ;;  %v762_v7 = vmul.f32 %v737_v25, %v1553_v51  ;;  %v763_v2 = vmul.f32 %v737_v25, %v1559_v54  ;;  %v764_v46 = vmul.f32 %v737_v25, %v1561_v55  ;;  %v857_v50 = vld [vmem:[%s1948_s4 + $0x40] sm:$0xff]  ;;  %v858_v51 = vld [vmem:[%s1948_s4 + $0x48] sm:$0xff]  ;;  %v859_v54 = vld [vmem:[%s1948_s4 + $0x50] sm:$0xff] }
 0x2ca   :  { %v765_v15 = vmul.f32 %v737_v25, %v1608_v19  ;;  %v766_v16 = vmul.f32 %v737_v25, %v1614_v24  ;;  %v860_v19 = vld [vmem:[%s1948_s4 + $0x58] sm:$0xff]  ;;  %v862_v24 = vld [vmem:[%s1948_s4 + $0x68] sm:$0xff] }
 0x2cc   :  { %v792_v52 = vpop.permute.xlu1 %791 }
 0x2cd   :  { %v814_v29 = vadd.f32 %v792_v52, %v754_v4  ;;  %v815_v26 = vadd.f32 %v792_v52, %v755_v31  ;;  %v816_v36 = vadd.f32 %v792_v52, %v756_v11  ;;  %v817_v38 = vadd.f32 %v792_v52, %v757_v20 }
 0x2ce   :  { %v818_v18 = vadd.f32 %v792_v52, %v758_v17  ;;  %v819_v21 = vadd.f32 %v792_v52, %v759_v22  ;;  %v820_v35 = vadd.f32 %v792_v52, %v760_v27  ;;  %v767_v4 = vmul.f32 %v737_v25, %v1612_v23  ;;  %v861_v23 = vld [vmem:[%s1948_s4 + $0x60] sm:$0xff] }
 0x2cf   :  { %v884_v42 = vadd.f32 %v849_v32, %v814_v29  ;;  %v885_v56 = vadd.f32 %v850_v47, %v815_v26  ;;  %v886_v45 = vadd.f32 %v851_v48, %v816_v36  ;;  %v887_v60 = vadd.f32 %v852_v49, %v817_v38  ;;  %v1954_v26 = vld [vmem:[#allocation5_spill] sm:$0xff] }
 0x2d0   :  { %v888_v41 = vadd.f32 %v853_v9, %v818_v18  ;;  %v889_v28 = vadd.f32 %v854_v12, %v819_v21  ;;  %v890_v14 = vadd.f32 %v855_v13, %v820_v35  ;;  %v742_v37 = vpop.permute.xlu1 %741 }
 0x2d1   :  { %919 = vst [vmem:[#allocation2] sm:$0xff] %v884_v42  ;;  %920 = vst [vmem:[#allocation2 + $0x8] sm:$0xff] %v885_v56  ;;  %v768_v29 = vmul.f32 %v742_v37, %v1557_v53  ;;  %v769_v36 = vmul.f32 %v742_v37, %v1954_v26  ;;  %v770_v38 = vmul.f32 %v742_v37, %v1565_v57  ;;  %v863_v42 = vld [vmem:[%s1948_s4 + $0x70] sm:$0xff]  ;;  %v864_v56 = vld [vmem:[%s1948_s4 + $0x78] sm:$0xff] }
 0x2d2   :  { %921 = vst [vmem:[#allocation2 + $0x10] sm:$0xff] %v886_v45  ;;  %922 = vst [vmem:[#allocation2 + $0x18] sm:$0xff] %v887_v60  ;;  %v771_v18 = vmul.f32 %v742_v37, %v1569_v59  ;;  %v772_v21 = vmul.f32 %v742_v37, %v1622_v30  ;;  %v773_v35 = vmul.f32 %v742_v37, %v1625_v33  ;;  %v865_v57 = vld [vmem:[%s1948_s4 + $0x80] sm:$0xff]  ;;  %v866_v59 = vld [vmem:[%s1948_s4 + $0x88] sm:$0xff] }
 0x2d3   :  { %923 = vst [vmem:[#allocation2 + $0x20] sm:$0xff] %v888_v41  ;;  %924 = vst [vmem:[#allocation2 + $0x28] sm:$0xff] %v889_v28  ;;  %v774_v53 = vmul.f32 %v742_v37, %v1627_v34  ;;  %v1955_v45 = vld [vmem:[#allocation6_spill] sm:$0xff]  ;;  %v867_v41 = vld [vmem:[%s1948_s4 + $0x90] sm:$0xff] }
 0x2d4   :  { %925 = vst.msk [vmem:[#allocation2 + $0x30] sm:$0xff] %vm527_vm2, %v890_v14  ;;  %v797_v55 = vpop.permute.xlu1 %796  ;;  %v868_v28 = vld [vmem:[%s1948_s4 + $0x98] sm:$0xff] }
 0x2d5   :  { %v821_v25 = vadd.f32 %v797_v55, %v761_v40  ;;  %v822_v31 = vadd.f32 %v797_v55, %v762_v7  ;;  %v823_v11 = vadd.f32 %v797_v55, %v763_v2  ;;  %v824_v20 = vadd.f32 %v797_v55, %v764_v46 }
 0x2d6   :  { %v825_v32 = vadd.f32 %v797_v55, %v765_v15  ;;  %v826_v17 = vadd.f32 %v797_v55, %v766_v16  ;;  %v827_v22 = vadd.f32 %v797_v55, %v767_v4 }
 0x2d7   :  { %v891_v27 = vadd.f32 %v856_v61, %v821_v25  ;;  %v892_v47 = vadd.f32 %v857_v50, %v822_v31  ;;  %v893_v48 = vadd.f32 %v858_v51, %v823_v11  ;;  %v894_v49 = vadd.f32 %v859_v54, %v824_v20 }
 0x2d8   :  { %v895_v52 = vadd.f32 %v860_v19, %v825_v32  ;;  %v896_v9 = vadd.f32 %v861_v23, %v826_v17  ;;  %v897_v12 = vadd.f32 %v862_v24, %v827_v22  ;;  %v1832_v13 = vpop.permute.xlu1 %746  ;;  %v879_v32 = vld [vmem:[%s1948_s4 + $0xf0] sm:$0xff]  ;;  %v881_v22 = vld [vmem:[%s1948_s4 + $0x100] sm:$0xff] }
 0x2d9   :  { %926 = vst [vmem:[#allocation2 + $0x38] sm:$0xff] %v891_v27  ;;  %927 = vst [vmem:[#allocation2 + $0x40] sm:$0xff] %v892_v47  ;;  %v1856_v33 = vmul.f32 %v1832_v13, %v1567_v58  ;;  %v1860_v34 = vmul.f32 %v1832_v13, %v1955_v45  ;;  %v1864_v60 = vmul.f32 %v1832_v13, %v1575_v62  ;;  %v869_v58 = vld [vmem:[%s1948_s4 + $0xa0] sm:$0xff]  ;;  %v882_v27 = vld [vmem:[%s1948_s4 + $0x108] sm:$0xff] }
 0x2da   :  { %928 = vst [vmem:[#allocation2 + $0x48] sm:$0xff] %v893_v48  ;;  %929 = vst [vmem:[#allocation2 + $0x50] sm:$0xff] %v894_v49  ;;  %v1877_v61 = vmul.f32 %v1832_v13, %v1577_v63  ;;  %v779_v23 = vmul.f32 %v1832_v13, %v1634_v39  ;;  %v877_v63 = vld [vmem:[%s1948_s4 + $0xe0] sm:$0xff]  ;;  %v878_v39 = vld [vmem:[%s1948_s4 + $0xe8] sm:$0xff]  ;;  %v780_v17 = vmul.f32 %v1832_v13, %v1637_v43 }
 0x2db   :  { %930 = vst [vmem:[#allocation2 + $0x58] sm:$0xff] %v895_v52  ;;  %931 = vst [vmem:[#allocation2 + $0x60] sm:$0xff] %v896_v9  ;;  %v812_v20 = vpop.permute.xlu0 %811  ;;  %v883_v47 = vld [vmem:[%s1948_s4 + $0x110] sm:$0xff]  ;;  %v781_v43 = vmul.f32 %v1832_v13, %v1639_v44  ;;  %v872_v44 = vld [vmem:[%s1948_s4 + $0xb8] sm:$0xff] }
 0x2dc   :  { %932 = vst.msk [vmem:[#allocation2 + $0x68] sm:$0xff] %vm527_vm2, %v897_v12  ;;  %v802_v30 = vpop.permute.xlu1 %801  ;;  %v873_v13 = vld [vmem:[%s1948_s4 + $0xc0] sm:$0xff] }
 0x2dd   :  { %v828_v14 = vadd.f32 %v802_v30, %v768_v29  ;;  %v829_v37 = vadd.f32 %v802_v30, %v769_v36  ;;  %v830_v40 = vadd.f32 %v802_v30, %v770_v38  ;;  %v831_v7 = vadd.f32 %v802_v30, %v771_v18  ;;  %v870_v18 = vld [vmem:[%s1948_s4 + $0xa8] sm:$0xff] }
 0x2de   :  { %v832_v2 = vadd.f32 %v802_v30, %v772_v21  ;;  %v833_v46 = vadd.f32 %v802_v30, %v773_v35  ;;  %v834_v62 = vadd.f32 %v802_v30, %v774_v53  ;;  %v871_v21 = vld [vmem:[%s1948_s4 + $0xb0] sm:$0xff]  ;;  %v876_v30 = vld [vmem:[%s1948_s4 + $0xd8] sm:$0xff] }
 0x2df   :  { %v898_v15 = vadd.f32 %v863_v42, %v828_v14  ;;  %v899_v16 = vadd.f32 %v864_v56, %v829_v37  ;;  %v900_v4 = vadd.f32 %v865_v57, %v830_v40  ;;  %v901_v50 = vadd.f32 %v866_v59, %v831_v7  ;;  %v874_v56 = vld [vmem:[%s1948_s4 + $0xc8] sm:$0xff]  ;;  %v875_v59 = vld [vmem:[%s1948_s4 + $0xd0] sm:$0xff] }
 0x2e0   :  { %v902_v51 = vadd.f32 %v867_v41, %v832_v2  ;;  %v903_v54 = vadd.f32 %v868_v28, %v833_v46  ;;  %v904_v55 = vadd.f32 %v869_v58, %v834_v62  ;;  %v752_v19 = vpop.permute.xlu1 %751 }
 0x2e1   :  { %933 = vst [vmem:[#allocation2 + $0x70] sm:$0xff] %v898_v15  ;;  %934 = vst [vmem:[#allocation2 + $0x78] sm:$0xff] %v899_v16  ;;  %v782_v24 = vmul.f32 %v752_v19, %v1579_v0  ;;  %v783_v25 = vmul.f32 %v752_v19, %v1588_v5  ;;  %v784_v31 = vmul.f32 %v752_v19, %v1584_v3  ;;  %v880_v0 = vld [vmem:[%s1948_s4 + $0xf8] sm:$0xff]  ;;  %s1073_s4 = scalar_lea.vmem %s960_s15, 4480 }
 0x2e2   :  { %935 = vst [vmem:[#allocation2 + $0x80] sm:$0xff] %v900_v4  ;;  %936 = vst [vmem:[#allocation2 + $0x88] sm:$0xff] %v901_v50  ;;  %v785_v11 = vmul.f32 %v752_v19, %v1590_v6  ;;  %v786_v3 = vmul.f32 %v752_v19, %v1645_v1  ;;  %v787_v5 = vmul.f32 %v752_v19, %v1648_v8  ;;  %p1074_p0 = scmp.ne.s32.totalorder %s960_s15, %s1073_s4  ;;  %p1079_p2 = scmp.lt.s32.totalorder %s1073_s4, %s1073_s4 }
 0x2e3   :  { %937 = vst [vmem:[#allocation2 + $0x90] sm:$0xff] %v902_v51  ;;  %938 = vst [vmem:[#allocation2 + $0x98] sm:$0xff] %v903_v54  ;;  %v788_v6 = vmul.f32 %v752_v19, %v1650_v10  ;;  %v842_v1 = vadd.f32 %v812_v20, %v782_v24  ;;  %v843_v48 = vadd.f32 %v812_v20, %v783_v25 }
 0x2e4   :  { %939 = vst.msk [vmem:[#allocation2 + $0xa0] sm:$0xff] %vm527_vm2, %v904_v55  ;;  %v844_v8 = vadd.f32 %v812_v20, %v784_v31  ;;  %v845_v49 = vadd.f32 %v812_v20, %v785_v11  ;;  %v846_v10 = vadd.f32 %v812_v20, %v786_v3  ;;  %v847_v52 = vadd.f32 %v812_v20, %v787_v5  ;;  %v807_v12 = vpop.permute.xlu1 %806  ;;  %p1080_p3 = por %p1079_p2, %p1078_p1 }
 0x2e5   :  { %v848_v9 = vadd.f32 %v812_v20, %v788_v6  ;;  %v912_v29 = vadd.f32 %v877_v63, %v842_v1  ;;  %v913_v26 = vadd.f32 %v878_v39, %v843_v48  ;;  %v835_v57 = vadd.f32 %v807_v12, %v1856_v33 }
 0x2e6   :  { %v914_v36 = vadd.f32 %v879_v32, %v844_v8  ;;  %v915_v38 = vadd.f32 %v880_v0, %v845_v49  ;;  %v916_v35 = vadd.f32 %v881_v22, %v846_v10  ;;  %v917_v42 = vadd.f32 %v882_v27, %v847_v52  ;;  %p1081_p4 = pnand %p1080_p3, %p1074_p0 }
 0x2e7   :  { %v918_v53 = vadd.f32 %v883_v47, %v848_v9  ;;  %947 = vst [vmem:[#allocation2 + $0xe0] sm:$0xff] %v912_v29  ;;  %948 = vst [vmem:[#allocation2 + $0xe8] sm:$0xff] %v913_v26  ;;  %v836_v45 = vadd.f32 %v807_v12, %v1860_v34  ;;  %v837_v41 = vadd.f32 %v807_v12, %v1864_v60 }
 0x2e8   :  { %949 = vst [vmem:[#allocation2 + $0xf0] sm:$0xff] %v914_v36  ;;  %950 = vst [vmem:[#allocation2 + $0xf8] sm:$0xff] %v915_v38  ;;  %v838_v28 = vadd.f32 %v807_v12, %v1877_v61  ;;  %v839_v58 = vadd.f32 %v807_v12, %v779_v23  ;;  %v840_v33 = vadd.f32 %v807_v12, %v780_v17 }
 0x2e9   :  { %951 = vst [vmem:[#allocation2 + $0x100] sm:$0xff] %v916_v35  ;;  %952 = vst [vmem:[#allocation2 + $0x108] sm:$0xff] %v917_v42  ;;  %v841_v14 = vadd.f32 %v807_v12, %v781_v43  ;;  %v905_v37 = vadd.f32 %v870_v18, %v835_v57  ;;  %v906_v40 = vadd.f32 %v871_v21, %v836_v45 }
 0x2ea   :  { %953 = vst.msk [vmem:[#allocation2 + $0x110] sm:$0xff] %vm527_vm2, %v918_v53  ;;  %v907_v7 = vadd.f32 %v872_v44, %v837_v41  ;;  %v908_v2 = vadd.f32 %v873_v13, %v838_v28  ;;  %v909_v46 = vadd.f32 %v874_v56, %v839_v58  ;;  %v910_v62 = vadd.f32 %v875_v59, %v840_v33 }
 0x2eb   :  { %v911_v34 = vadd.f32 %v876_v30, %v841_v14  ;;  %940 = vst [vmem:[#allocation2 + $0xa8] sm:$0xff] %v905_v37  ;;  %941 = vst [vmem:[#allocation2 + $0xb0] sm:$0xff] %v906_v40 }
 0x2ec   :  { %942 = vst [vmem:[#allocation2 + $0xb8] sm:$0xff] %v907_v7  ;;  %943 = vst [vmem:[#allocation2 + $0xc0] sm:$0xff] %v908_v2 }
 0x2ed   :  { %944 = vst [vmem:[#allocation2 + $0xc8] sm:$0xff] %v909_v46  ;;  %945 = vst [vmem:[#allocation2 + $0xd0] sm:$0xff] %v910_v62 }
 0x2ee   :  { %946 = vst.msk [vmem:[#allocation2 + $0xd8] sm:$0xff] %vm527_vm2, %v911_v34 }
 0x2ef   :  { %1084 = shalt.err (!%p1081_p4)
}
 0x2f0   :  { %s1099_s16 = smov 896   ;;  %s1100_s17 = smov 56  }
 0x2f1   :  { %965 = dma.vmem_to_hbm [thread:$0]  %s960_s15, 4480, %s1949_s5, [#allocation3], %s1099_s16, %s1099_s16, %s1100_s17  }
 0x2f2   :  { %1093 = dma.done.wait [#allocation3], 4480  }
 0x2f3   :  { %1094 = vsyncadd [#allocation3], 4294962816 }
 0x2f4   :  { %969 = vsyncpa [#allocation3], 1 }

</bundles_post_ra>
